<compile_context>
chip_gen: v7x
topology: tpu7x:2x2x1
jax: 0.10.0
libtpu: 0.0.40
codegen_flags: <defaults>
</compile_context>

<pallas_src>
import jax
import jax.numpy as jnp
from jax import lax
from jax.experimental import pallas as pl
from jax.experimental.pallas import tpu as pltpu

_LANE = 128
_MAX_TB = 16384          # keeps (h1+h2) x tb f32 intermediates well inside scoped VMEM


def _round_up(x, m):
    return (x + m - 1) // m * m


def _num_tensorcores():
    """Best-effort: only v7x has 2 TensorCores per chip; default to 1."""
    try:
        kind = jax.devices()[0].device_kind.lower()
        return 2 if "v7" in kind else 1
    except Exception:
        return 1


def _mlp_critic_kernel(x_ref, w1_ref, w2_ref, w3_ref, b_ref, o_ref):
    # x_ref: (tb, obs_dim) f32 (natural layout); w*_ref: (out, in) bf16;
    # b_ref: (h1+h2+1, 1) f32 packed biases; o_ref: (1, tb) f32 lane-dense slab.
    h1n = w1_ref.shape[0]
    h2n = w2_ref.shape[0]

    b = b_ref[...]                        # (h1+h2+1, 1) f32
    b1 = b[:h1n]                          # (h1, 1)
    b2 = b[h1n:h1n + h2n]                 # (h2, 1)
    b3 = b[h1n + h2n:]                    # (1, 1)

    x = x_ref[...].astype(jnp.bfloat16)   # in-kernel cast; no extra HBM pass

    # Layer 1: h^T = W1 @ x^T, written as NT dot_general (contract obs_dim axes)
    # so the batch ends up on the lane axis.  bf16 inputs, f32 accumulation.
    h = lax.dot_general(w1_ref[...], x, (((1,), (1,)), ((), ())),
                        preferred_element_type=jnp.float32)          # (h1, tb)
    h = jnp.maximum(h + b1, 0.0).astype(jnp.bfloat16)

    # Layer 2: Linear + ReLU
    h = jnp.dot(w2_ref[...], h, preferred_element_type=jnp.float32)  # (h2, tb)
    h = jnp.maximum(h + b2, 0.0).astype(jnp.bfloat16)

    # Layer 3: Linear (Identity output activation)
    v = jnp.dot(w3_ref[...], h, preferred_element_type=jnp.float32)  # (1, tb)
    o_ref[...] = (v + b3).astype(o_ref.dtype)


def mlp_critic_forward(obs, params, *, batch_tile=2048):
    """obs: (B, obs_dim) f32 -> value: (B,) f32  (== torch.squeeze(v_net(obs), -1))."""
    w1, b1, w2, b2, w3, b3 = params       # weights (out, in), biases (out,)
    B, obs_dim = obs.shape

    # --- batch tile selection: no padding, no copies -------------------------
    tb = min(_round_up(batch_tile, _LANE), _round_up(B, _LANE), _MAX_TB)
    if tb >= B:
        tb = B                            # single full-extent block (no partial block)
    if _num_tensorcores() >= 2 and B > _LANE:
        # v7x only: ensure an even number of >= 2 parallel steps so both
        # TensorCores get balanced work under dimension_semantics=("parallel",).
        n = max(2, pl.cdiv(B, tb))
        n = n + (n % 2)
        tb_split = max(_LANE, _round_up(pl.cdiv(B, n), _LANE))
        if tb_split < B:
            tb = min(tb, tb_split)
    grid_n = pl.cdiv(B, tb)

    # Tiny one-time parameter transforms (weights stay resident in VMEM).
    w1b = w1.astype(jnp.bfloat16)
    w2b = w2.astype(jnp.bfloat16)
    w3b = w3.astype(jnp.bfloat16)
    b_packed = jnp.concatenate([b1, b2, b3]).reshape(-1, 1).astype(jnp.float32)

    def resident(a):
        nd = a.ndim
        return pl.BlockSpec(a.shape, lambda i: (0,) * nd)   # same block every step

    out = pl.pallas_call(
        _mlp_critic_kernel,
        out_shape=jax.ShapeDtypeStruct((1, B), jnp.float32),
        grid_spec=pltpu.PrefetchScalarGridSpec(
            num_scalar_prefetch=0,
            grid=(grid_n,),
            in_specs=[
                pl.BlockSpec((tb, obs_dim), lambda i: (i, 0)),  # contiguous f32 obs tile
                resident(w1b), resident(w2b), resident(w3b),    # resident bf16 weights
                resident(b_packed),                              # packed f32 biases
            ],
            out_specs=pl.BlockSpec((1, tb), lambda i: (0, i)),   # lane-dense output slab
        ),
        compiler_params=pltpu.CompilerParams(
            dimension_semantics=("parallel",)),
    )(obs, w1b, w2b, w3b, b_packed)

    return out[0]                                                # (B,)


def init_mlp_critic_params(key, obs_dim, hidden_sizes=(64, 64)):
    """nn.Linear default init: U(-1/sqrt(fan_in), +1/sqrt(fan_in)).
    Weights stored PyTorch-style as (out, in); biases as (out,)."""
    sizes = [obs_dim] + list(hidden_sizes) + [1]
    params = []
    for j in range(len(sizes) - 1):
        fan_in, fan_out = sizes[j], sizes[j + 1]
        key, kw, kb = jax.random.split(key, 3)
        bound = 1.0 / jnp.sqrt(jnp.float32(fan_in))
        w = jax.random.uniform(kw, (fan_out, fan_in), jnp.float32, -bound, bound)
        b = jax.random.uniform(kb, (fan_out,), jnp.float32, -bound, bound)
        params += [w, b]
    return tuple(params)


def _reference_forward_f32(obs, params):
    """Pure-f32 JAX reference of the PyTorch forward pass."""
    w1, b1, w2, b2, w3, b3 = params
    h = jnp.maximum(obs @ w1.T + b1, 0.0)
    h = jnp.maximum(h @ w2.T + b2, 0.0)
    v = h @ w3.T + b3
    return jnp.squeeze(v, axis=-1)


def _reference_forward_bf16(obs, params):
    """Same bf16-input / f32-accumulate recipe as the kernel (tight check)."""
    w1, b1, w2, b2, w3, b3 = params
    bf = jnp.bfloat16
    h = jnp.dot(obs.astype(bf), w1.T.astype(bf), preferred_element_type=jnp.float32) + b1
    h = jnp.maximum(h, 0.0)
    h = jnp.dot(h.astype(bf), w2.T.astype(bf), preferred_element_type=jnp.float32) + b2
    h = jnp.maximum(h, 0.0)
    v = jnp.dot(h.astype(bf), w3.T.astype(bf), preferred_element_type=jnp.float32) + b3
    return jnp.squeeze(v, axis=-1)


if __name__ == "__main__":
    key = jax.random.PRNGKey(0)
    k_obs, k_par = jax.random.split(key)

    B, OBS_DIM = 8, 16
    HIDDEN = (64, 64)

    obs = jax.random.normal(k_obs, (B, OBS_DIM), jnp.float32)
    params = init_mlp_critic_params(k_par, OBS_DIM, HIDDEN)

    v = mlp_critic_forward(obs, params)
    v = jax.block_until_ready(v)
    assert v.shape == (B,), v.shape

    ref_bf16 = _reference_forward_bf16(obs, params)
    ref_f32 = _reference_forward_f32(obs, params)
    assert jnp.allclose(v, ref_bf16, atol=1e-3, rtol=1e-3), "mismatch vs bf16-matched reference"
    assert jnp.allclose(v, ref_f32, atol=5e-2, rtol=5e-2), "mismatch vs f32 reference"

    print("KERNEL_OK")
</pallas_src>

<mosaic_0001>
module attributes {stable_mosaic.version = 11 : i64} {
  func.func @_mlp_critic_kernel(%arg0: i32, %arg1: memref<8x16xf32, #tpu.memory_space<vmem>>, %arg2: memref<64x16xbf16, #tpu.memory_space<vmem>>, %arg3: memref<64x64xbf16, #tpu.memory_space<vmem>>, %arg4: memref<1x64xbf16, #tpu.memory_space<vmem>>, %arg5: memref<129x1xf32, #tpu.memory_space<vmem>>, %arg6: memref<1x8xf32, #tpu.memory_space<vmem>>) attributes {dimension_semantics = [#tpu.dimension_semantics<parallel>], iteration_bounds = array<i64: 1>, scalar_prefetch = 0 : i64, scratch_operands = 0 : i64, tpu.core_type = #tpu.core_type<tc>, window_params = [{transform_indices = @transform_0, window_bounds = array<i64: 8, 16>}, {pipeline_mode = #tpu.pipeline_mode<synchronous>, transform_indices = @transform_1, window_bounds = array<i64: 64, 16>}, {pipeline_mode = #tpu.pipeline_mode<synchronous>, transform_indices = @transform_2, window_bounds = array<i64: 64, 64>}, {pipeline_mode = #tpu.pipeline_mode<synchronous>, transform_indices = @transform_3, window_bounds = array<i64: 1, 64>}, {pipeline_mode = #tpu.pipeline_mode<synchronous>, transform_indices = @transform_4, window_bounds = array<i64: 129, 1>}, {transform_indices = @transform_5, window_bounds = array<i64: 1, 8>}]} {
    %c0 = arith.constant 0 : index
    %c0_0 = arith.constant 0 : index
    %0 = vector.load %arg5[%c0, %c0_0] : memref<129x1xf32, #tpu.memory_space<vmem>>, vector<129x1xf32>
    %1 = vector.extract_strided_slice %0 {offsets = [0, 0], sizes = [64, 1], strides = [1, 1]} : vector<129x1xf32> to vector<64x1xf32>
    %2 = vector.extract_strided_slice %0 {offsets = [64, 0], sizes = [64, 1], strides = [1, 1]} : vector<129x1xf32> to vector<64x1xf32>
    %3 = vector.extract_strided_slice %0 {offsets = [128, 0], sizes = [1, 1], strides = [1, 1]} : vector<129x1xf32> to vector<1x1xf32>
    %c0_1 = arith.constant 0 : index
    %c0_2 = arith.constant 0 : index
    %4 = vector.load %arg1[%c0_1, %c0_2] : memref<8x16xf32, #tpu.memory_space<vmem>>, vector<8x16xf32>
    %5 = arith.truncf %4 : vector<8x16xf32> to vector<8x16xbf16>
    %c0_3 = arith.constant 0 : index
    %c0_4 = arith.constant 0 : index
    %6 = vector.load %arg2[%c0_3, %c0_4] : memref<64x16xbf16, #tpu.memory_space<vmem>>, vector<64x16xbf16>
    %cst = arith.constant dense<0.000000e+00> : vector<64x8xf32>
    %7 = tpu.matmul %6, %5, %cst {dimension_numbers = #tpu.dot_dimension_numbers<[1], [1], [0], [0], [0, 0, 1, 0], [], []>} : vector<64x16xbf16>, vector<8x16xbf16>, vector<64x8xf32> -> vector<64x8xf32>
    %8 = vector.broadcast %1 : vector<64x1xf32> to vector<64x8xf32>
    %9 = arith.addf %7, %8 : vector<64x8xf32>
    %cst_5 = arith.constant 0.000000e+00 : f32
    %10 = vector.broadcast %cst_5 : f32 to vector<64x8xf32>
    %11 = arith.maximumf %9, %10 : vector<64x8xf32>
    %12 = arith.truncf %11 : vector<64x8xf32> to vector<64x8xbf16>
    %c0_6 = arith.constant 0 : index
    %c0_7 = arith.constant 0 : index
    %13 = vector.load %arg3[%c0_6, %c0_7] : memref<64x64xbf16, #tpu.memory_space<vmem>>, vector<64x64xbf16>
    %cst_8 = arith.constant dense<0.000000e+00> : vector<64x8xf32>
    %14 = tpu.matmul %13, %12, %cst_8 {dimension_numbers = #tpu.dot_dimension_numbers<[1], [0], [0], [1], [0, 0, 1, 1], [], []>} : vector<64x64xbf16>, vector<64x8xbf16>, vector<64x8xf32> -> vector<64x8xf32>
    %15 = vector.broadcast %2 : vector<64x1xf32> to vector<64x8xf32>
    %16 = arith.addf %14, %15 : vector<64x8xf32>
    %cst_9 = arith.constant 0.000000e+00 : f32
    %17 = vector.broadcast %cst_9 : f32 to vector<64x8xf32>
    %18 = arith.maximumf %16, %17 : vector<64x8xf32>
    %19 = arith.truncf %18 : vector<64x8xf32> to vector<64x8xbf16>
    %c0_10 = arith.constant 0 : index
    %c0_11 = arith.constant 0 : index
    %20 = vector.load %arg4[%c0_10, %c0_11] : memref<1x64xbf16, #tpu.memory_space<vmem>>, vector<1x64xbf16>
    %cst_12 = arith.constant dense<0.000000e+00> : vector<1x8xf32>
    %21 = tpu.matmul %20, %19, %cst_12 {dimension_numbers = #tpu.dot_dimension_numbers<[1], [0], [0], [1], [0, 0, 1, 1], [], []>} : vector<1x64xbf16>, vector<64x8xbf16>, vector<1x8xf32> -> vector<1x8xf32>
    %22 = vector.broadcast %3 : vector<1x1xf32> to vector<1x8xf32>
    %23 = arith.addf %21, %22 : vector<1x8xf32>
    %c0_13 = arith.constant 0 : index
    %c0_14 = arith.constant 0 : index
    %24 = vector.load %arg6[%c0_13, %c0_14] : memref<1x8xf32, #tpu.memory_space<vmem>>, vector<1x8xf32>
    tpu.vector_store %arg6[%c0_13, %c0_14], %23 {strides = array<i32>} : memref<1x8xf32, #tpu.memory_space<vmem>>, vector<1x8xf32>,
    return
  }
  func.func @transform_0(%arg0: i32) -> (i32, i32) {
    %c0_i32 = arith.constant 0 : i32
    %c0_i32_0 = arith.constant 0 : i32
    return %arg0, %c0_i32 : i32, i32
  }
  func.func @transform_1(%arg0: i32) -> (i32, i32) {
    %c0_i32 = arith.constant 0 : i32
    %c0_i32_0 = arith.constant 0 : i32
    %c0_i32_1 = arith.constant 0 : i32
    return %c0_i32, %c0_i32_0 : i32, i32
  }
  func.func @transform_2(%arg0: i32) -> (i32, i32) {
    %c0_i32 = arith.constant 0 : i32
    %c0_i32_0 = arith.constant 0 : i32
    %c0_i32_1 = arith.constant 0 : i32
    return %c0_i32, %c0_i32_0 : i32, i32
  }
  func.func @transform_3(%arg0: i32) -> (i32, i32) {
    %c0_i32 = arith.constant 0 : i32
    %c0_i32_0 = arith.constant 0 : i32
    %c0_i32_1 = arith.constant 0 : i32
    return %c0_i32, %c0_i32_0 : i32, i32
  }
  func.func @transform_4(%arg0: i32) -> (i32, i32) {
    %c0_i32 = arith.constant 0 : i32
    %c0_i32_0 = arith.constant 0 : i32
    %c0_i32_1 = arith.constant 0 : i32
    return %c0_i32, %c0_i32_0 : i32, i32
  }
  func.func @transform_5(%arg0: i32) -> (i32, i32) {
    %c0_i32 = arith.constant 0 : i32
    %c0_i32_0 = arith.constant 0 : i32
    return %c0_i32, %arg0 : i32, i32
  }
}

</mosaic_0001>

<bundles_post_ra>
// kernel: tpu_custom_call.1
= control target key start
LH: loop header
LB: loop body
LE: loop exit
PB: predicated region body
PF: predicated region fallthrough
CT: control target
= control target key end

     0   :  { %vm109_vm0 = vcmask 130048   ;;  %v537_v3 = vmov 0   ;;  %s675_s0 = inlined_call_operand.vmem [shape: f32[8,16], index: 0, kind: input, shape index: {}]   ;;  %s676_s1 = inlined_call_operand.vmem [shape: bf16[64,16], index: 1, kind: input, shape index: {}]   ;;  %s677_s2 = inlined_call_operand.vmem [shape: bf16[64,64], index: 2, kind: input, shape index: {}]   ;;  %s678_s3 = inlined_call_operand.vmem [shape: bf16[1,64], index: 3, kind: input, shape index: {}]   ;;  %s679_s4 = inlined_call_operand.vmem [shape: f32[129,1], index: 4, kind: input, shape index: {}]   ;;  %s680_s5 = inlined_call_operand.hbm [shape: f32[1,8], index: 5, kind: output, shape index: {}]  }
   0x1   :  { %v39_v0 = vld [vmem:[%s675_s0] sm:$0xff]  ;;  %503 = vset.pattern.permute.xlu0 %v537_v3  ;;  %504 = vset.pattern.permute.xlu1 %v537_v3  ;;  %v24_v6 = vld [vmem:[%s679_s4 + $0x10] sm:$0xff]  ;;  %v23_v7 = vld [vmem:[%s679_s4 + $0x8] sm:$0xff] }
   0x2   :  { %v40_v1 = vpack.c.bf16 %v39_v0, %v39_v0  ;;  %v505_v2 = vld [vmem:[%s676_s1] sm:$0xff]   ;;  %61 = vperm.xlu1 %504, %v24_v6   ;;  %v506_v8 = vld [vmem:[%s676_s1 + $0x8] sm:$0xff]   ;;  %v25_v9 = vld [vmem:[%s679_s4 + $0x18] sm:$0xff] }
   0x3   :  { %462 = vmatprep.mubr.msk.bf16.mxu0 %vm109_vm0, %v505_v2  ;;  %v22_v5 = vld [vmem:[%s679_s4] sm:$0xff]  ;;  %v507_v10 = vld [vmem:[%s676_s1 + $0x10] sm:$0xff]   ;;  %v27_v12 = vld [vmem:[%s679_s4 + $0x28] sm:$0xff] }
   0x4   :  { %498 = vmatprep.subr.msk.bf16.mxu0 %vm109_vm0, %v40_v1  ;;  %v123_v4 = vsel %vm109_vm0, %v40_v1, 0  ;;  %51 = vperm.xlu0 %503, %v22_v5   ;;  %v26_v11 = vld [vmem:[%s679_s4 + $0x20] sm:$0xff] }
   0x5   :  { %461 = vmatpush3.bf16.xpose.msra.mxu0 %v123_v4 }
   0x6   :  { %66 = vperm.xlu1 %504, %v25_v9  }
   0x8   :  { %56 = vperm.xlu0 %503, %v23_v7  }
   0xc   :  { %463 = vmatmul.mubr.msk.bf16.vlgmr.msra.gmra.mrb[0].mxu0 %vm109_vm0, %v506_v8 }
   0xd   :  { %466 = vmatprep.mubr.msk.bf16.mxu0 %vm109_vm0, %v507_v10 }
   0xe   :  { %10 = vsyncpa [#allocation3], 0  ;;  %71 = vperm.xlu0 %503, %v26_v11   ;;  %v28_v13 = vld [vmem:[%s679_s4 + $0x30] sm:$0xff]  ;;  %76 = vperm.xlu1 %504, %v27_v12   ;;  %v508_v14 = vld [vmem:[%s676_s1 + $0x18] sm:$0xff]   ;;  %vm270_vm1 = vcmask 523264   ;;  %v538_v1 = vmov 0.0  }
   0xf   :  { %v29_v15 = vld [vmem:[%s679_s4 + $0x38] sm:$0xff]  ;;  %v30_v16 = vld [vmem:[%s679_s4 + $0x40] sm:$0xff]  ;;  %v31_v17 = vld [vmem:[%s679_s4 + $0x48] sm:$0xff]  ;;  %486 = vmatprep.subr.bf16.mxu0 %v538_v1  ;;  %vm539_vm2 = vmmov 0   ;;  %s540_s17 = smov [#allocation2]   ;;  %vm409_vm3 = vcmask 57344  }
  0x10   :  { %v32_v18 = vld [vmem:[%s679_s4 + $0x50] sm:$0xff]  ;;  %v33_v19 = vld [vmem:[%s679_s4 + $0x58] sm:$0xff]  ;;  %v34_v20 = vld [vmem:[%s679_s4 + $0x60] sm:$0xff]  ;;  %s417_s18 = sshll.u32 %s540_s17, 4  ;;  %s418_s18 = int_to_ptr.vmem [resolvable:$true] %s417_s18 }
  0x11   :  { %v35_v21 = vld [vmem:[%s679_s4 + $0x68] sm:$0xff]  ;;  %v36_v22 = vld [vmem:[%s679_s4 + $0x70] sm:$0xff]  ;;  %v37_v23 = vld [vmem:[%s679_s4 + $0x78] sm:$0xff]  ;;  %s513_s19 = scalar_lea.vmem %s418_s18, 16  ;;  %s517_s20 = scalar_lea.vmem %s418_s18, 32 }
  0x12   :  { %81 = vperm.xlu0 %503, %v28_v13   ;;  %86 = vperm.xlu1 %504, %v29_v15   ;;  %v38_v24 = vld [vmem:[%s679_s4 + $0x80] sm:$0x1]  ;;  %v510_v62 = vld [vmem:[%s677_s2 + $0x8] sm:$0xff]   ;;  %v511_v63 = vld [vmem:[%s677_s2 + $0x10] sm:$0xff]   ;;  %p514_p0 = scmp.ne.s32.totalorder %s418_s18, %s513_s19  ;;  %p518_p1 = scmp.lt.s32.totalorder %s418_s18, %s418_s18 }
  0x13   :  { %v509_v25 = vld [vmem:[%s677_s2] sm:$0xff]   ;;  %v512_v0 = vld [vmem:[%s677_s2 + $0x18] sm:$0xff]   ;;  %p519_p2 = scmp.lt.s32.totalorder %s517_s20, %s513_s19 }
  0x14   :  { %467 = vmatmul.mubr.msk.bf16.gmra.mrb[4].mxu0 %vm109_vm0, %v508_v14  ;;  %478 = vmatprep.mubr.msk.bf16.mxu1 %vm270_vm1, %v509_v25 }
  0x15   :  { %494 = vmatprep.mubr.msk.bf16.mxu0 %vm539_vm2, %v538_v1  ;;  %p520_p3 = por %p519_p2, %p518_p1 }
  0x16   :  { %212 = vperm.xlu0 %503, %v30_v16   ;;  %217 = vperm.xlu1 %504, %v31_v17  }
  0x17   :  { %p521_p4 = pnand %p520_p3, %p514_p0 }
  0x1a   :  { %222 = vperm.xlu0 %503, %v32_v18   ;;  %227 = vperm.xlu1 %504, %v33_v19  }
  0x1e   :  { %232 = vperm.xlu0 %503, %v34_v20   ;;  %237 = vperm.xlu1 %504, %v35_v21  }
  0x22   :  { %242 = vperm.xlu0 %503, %v36_v22   ;;  %247 = vperm.xlu1 %504, %v37_v23  }
  0x26   :  { %363 = vperm.xlu0 %503, %v38_v24  }
  0x81   :  { %v62_v27 = vpop.permute.xlu1 %61 }
  0x83   :  { %v52_v26 = vpop.permute.xlu0 %51 }
  0x85   :  { %v67_v29 = vpop.permute.xlu1 %66 }
  0x87   :  { %v57_v28 = vpop.permute.xlu0 %56 }
  0x8d   :  { %v72_v33 = vpop.permute.xlu0 %71  ;;  %v77_v38 = vpop.permute.xlu1 %76 }
  0x91   :  { %v82_v45 = vpop.permute.xlu0 %81  ;;  %v87_v50 = vpop.permute.xlu1 %86 }
  0x95   :  { %v213_v2 = vpop.permute.xlu0 %212  ;;  %v218_v3 = vpop.permute.xlu1 %217 }
  0x99   :  { %v223_v4 = vpop.permute.xlu0 %222  ;;  %v228_v5 = vpop.permute.xlu1 %227 }
  0x9d   :  { %v233_v9 = vpop.permute.xlu0 %232  ;;  %v238_v14 = vpop.permute.xlu1 %237 }
  0xa1   :  { %v243_v21 = vpop.permute.xlu0 %242 }
  0xdf   :  { %v464_v30 = vpop.f32.mrb[0].mxu0 }
  0xe0   :  { %v168_v31 = vadd.f32 %v464_v30, %v62_v27  ;;  %v159_v32 = vpop.f32.mrb[1].mxu0 }
  0xe1   :  { %v160_v34 = vadd.f32 %v159_v32, %v52_v26  ;;  %v465_v35 = vpop.f32.mrb[2].mxu0  ;;  %v248_v26 = vpop.permute.xlu1 %247 }
  0xe2   :  { %v171_v36 = vadd.f32 %v465_v35, %v67_v29  ;;  %v162_v37 = vpop.f32.mrb[3].mxu0  ;;  %v192_v40 = vmax.f32 %v168_v31, 0.0 }
  0xe3   :  { %v163_v39 = vadd.f32 %v162_v37, %v57_v28  ;;  %v190_v42 = vmax.f32 %v160_v34, 0.0 }
  0xe4   :  { %v193_v41 = vmax.f32 %v171_v36, 0.0 }
  0xe5   :  { %v191_v43 = vmax.f32 %v163_v39, 0.0  ;;  %v364_v39 = vpop.permute.xlu0 %363 }
  0xe6   :  { %v199_v44 = vpack.c.bf16 %v193_v41, %v192_v40 }
  0xe7   :  { %v468_v46 = vpop.f32.mrb[4].mxu0  ;;  %v198_v47 = vpack.c.bf16 %v191_v43, %v190_v42 }
  0xe8   :  { %v184_v48 = vadd.f32 %v468_v46, %v82_v45  ;;  %v175_v49 = vpop.f32.mrb[5].mxu0 }
  0xe9   :  { %v176_v51 = vadd.f32 %v175_v49, %v72_v33  ;;  %v469_v52 = vpop.f32.mrb[6].mxu0  ;;  %470 = vmatprep.subr.bf16.mxu1 %v198_v47 }
  0xea   :  { %v187_v53 = vadd.f32 %v469_v52, %v87_v50  ;;  %v178_v54 = vpop.f32.mrb[7].mxu0  ;;  %471 = vmatpush3.bf16.msra.mxu1 %v198_v47  ;;  %v196_v56 = vmax.f32 %v184_v48, 0.0 }
  0xeb   :  { %v179_v55 = vadd.f32 %v178_v54, %v77_v38  ;;  %472 = vmatprep.subr.bf16.mxu1 %v199_v44  ;;  %v194_v58 = vmax.f32 %v176_v51, 0.0  ;;  %v360_v38 = vld [vmem:[%s678_s3] sm:$0x1] }
  0xec   :  { %v197_v57 = vmax.f32 %v187_v53, 0.0 }
  0xed   :  { %v195_v59 = vmax.f32 %v179_v55, 0.0 }
  0xee   :  { %v201_v60 = vpack.c.bf16 %v197_v57, %v196_v56  ;;  %473 = vmatpush3.bf16.msra.mxu1 %v199_v44 }
  0xef   :  { %v200_v61 = vpack.c.bf16 %v195_v59, %v194_v58 }
  0xf1   :  { %474 = vmatprep.subr.bf16.mxu1 %v200_v61 }
  0xf2   :  { %475 = vmatpush3.bf16.msra.mxu1 %v200_v61 }
  0xf3   :  { %476 = vmatprep.subr.bf16.mxu1 %v201_v60 }
  0xf6   :  { %477 = vmatpush3.bf16.msra.mxu1 %v201_v60 }
  0xf9   :  { %479 = vmatmul.mubr.msk.bf16.vlgmr.msra.gmra.mrb[0].mxu1 %vm270_vm1, %v510_v62 }
  0xfa   :  { %482 = vmatprep.mubr.msk.bf16.mxu1 %vm270_vm1, %v511_v63 }
 0x101   :  { %483 = vmatmul.mubr.msk.bf16.gmra.mrb[4].mxu1 %vm270_vm1, %v512_v0 }
 0x1cc   :  { %v480_v6 = vpop.f32.mrb[0].mxu1 }
 0x1cd   :  { %v326_v7 = vadd.f32 %v480_v6, %v223_v4  ;;  %v317_v8 = vpop.f32.mrb[1].mxu1 }
 0x1ce   :  { %v318_v10 = vadd.f32 %v317_v8, %v213_v2  ;;  %v481_v11 = vpop.f32.mrb[2].mxu1 }
 0x1cf   :  { %v329_v12 = vadd.f32 %v481_v11, %v228_v5  ;;  %v320_v13 = vpop.f32.mrb[3].mxu1  ;;  %v350_v16 = vmax.f32 %v326_v7, 0.0 }
 0x1d0   :  { %v321_v15 = vadd.f32 %v320_v13, %v218_v3  ;;  %v348_v18 = vmax.f32 %v318_v10, 0.0 }
 0x1d1   :  { %v351_v17 = vmax.f32 %v329_v12, 0.0 }
 0x1d2   :  { %v349_v19 = vmax.f32 %v321_v15, 0.0 }
 0x1d3   :  { %v357_v20 = vpack.c.bf16 %v351_v17, %v350_v16 }
 0x1d4   :  { %v356_v22 = vpack.c.bf16 %v349_v19, %v348_v18  ;;  %v484_v23 = vpop.f32.mrb[4].mxu1 }
 0x1d5   :  { %v342_v24 = vadd.f32 %v484_v23, %v243_v21  ;;  %v333_v25 = vpop.f32.mrb[5].mxu1 }
 0x1d6   :  { %v334_v27 = vadd.f32 %v333_v25, %v233_v9  ;;  %v485_v28 = vpop.f32.mrb[6].mxu1  ;;  %487 = vmatpush3.bf16.msra.mxu0 %v356_v22 }
 0x1d7   :  { %v345_v29 = vadd.f32 %v485_v28, %v248_v26  ;;  %v336_v30 = vpop.f32.mrb[7].mxu1  ;;  %488 = vmatprep.subr.bf16.mxu0 %v538_v1  ;;  %v354_v32 = vmax.f32 %v342_v24, 0.0 }
 0x1d8   :  { %v337_v31 = vadd.f32 %v336_v30, %v238_v14  ;;  %v352_v34 = vmax.f32 %v334_v27, 0.0 }
 0x1d9   :  { %v355_v33 = vmax.f32 %v345_v29, 0.0 }
 0x1da   :  { %v353_v35 = vmax.f32 %v337_v31, 0.0  ;;  %489 = vmatpush3.bf16.msra.mxu0 %v357_v20 }
 0x1db   :  { %v359_v36 = vpack.c.bf16 %v355_v33, %v354_v32  ;;  %490 = vmatprep.subr.bf16.mxu0 %v538_v1 }
 0x1dc   :  { %v358_v37 = vpack.c.bf16 %v353_v35, %v352_v34 }
 0x1de   :  { %491 = vmatpush3.bf16.msra.mxu0 %v358_v37 }
 0x1df   :  { %492 = vmatprep.subr.bf16.mxu0 %v538_v1 }
 0x1e2   :  { %493 = vmatpush3.bf16.msra.mxu0 %v359_v36 }
 0x1e5   :  { %495 = vmatmul.mubr.msk.bf16.vlgmr.msra.gmra.mrb[8].mxu0 %vm270_vm1, %v360_v38 }
 0x2b8   :  { %v403_v40 = vpop.f32.mrb[8].mxu0 }
 0x2b9   :  { %v404_v41 = vadd.f32 %v403_v40, %v364_v39  ;;  %v496_v42 = vpop.f32.mrb[9].mxu0 }
 0x2ba   :  { %v406_v43 = vpop.f32.mrb[10].mxu0 }
 0x2bb   :  { %v497_v44 = vpop.f32.mrb[11].mxu0  ;;  %410 = vst.msk [vmem:[#allocation2] sm:$0x1] %vm409_vm3, %v404_v41 }
 0x2bc   :  { %524 = shalt.err (!%p521_p4)
}
 0x2bd   :  { %s525_s22 = scalar_lea.hbm %s680_s5, 16 }
 0x2be   :  { %p526_p5 = scmp.ne.s32.totalorder %s680_s5, %s525_s22  ;;  %p529_p6 = scmp.lt.u32.totalorder %s525_s22, %s680_s5 }
 0x2c0   :  { %p531_p7 = pnand %p529_p6, %p526_p5 }
 0x2c2   :  { %534 = shalt.err (!%p531_p7)
}
 0x2c3   :  { %420 = dma.vmem_to_hbm [thread:$0]  %s418_s18, 16, %s680_s5, [#allocation3]  }
 0x2c4   :  { %535 = dma.done.wait [#allocation3], 16  }
 0x2c5   :  { %536 = vsyncadd [#allocation3], 4294967280 }
 0x2c6   :  { %424 = vsyncpa [#allocation3], 1 }

</bundles_post_ra>
